<compile_context>
chip_gen: v7x
topology: tpu7x:2x2x1
jax: 0.10.0
libtpu: 0.0.40
codegen_flags: <defaults>
</compile_context>

<pallas_src>
import jax
import jax.numpy as jnp
from jax.experimental import pallas as pl
from jax.experimental.pallas import tpu as pltpu


# Conservative per-kernel VMEM budget for the pipelined tile set: fits under
# v7x's 64 MiB physical VMEM with headroom, trivially fits v5e/v6e's 128 MiB.
_VMEM_TILE_BUDGET = 40 * 1024 * 1024
_TM_MAX = 512  # largest row tile ever used (also the budget reference for tk)


def _round_up(x: int, m: int) -> int:
    return ((x + m - 1) // m) * m


def _cdiv(a: int, b: int) -> int:
    return (a + b - 1) // b


def _resident_bytes(hidden_pad: int, ncls_pad: int) -> int:
    # b_enc (f32) + w_cls (bf16) + b_cls (f32); constant index maps -> loaded once.
    return hidden_pad * 4 + hidden_pad * ncls_pad * 2 + ncls_pad * 4


def _tile_vmem_bytes(tm: int, tk: int, hidden_pad: int, ncls_pad: int) -> int:
    # Double-buffered pipeline buffers: x tile (f32), w_enc tile (bf16),
    # feature + logits output tiles (f32), plus the resident head params.
    return 2 * (tm * tk * 4 + tk * hidden_pad * 2
                + tm * hidden_pad * 4 + tm * ncls_pad * 4
                + _resident_bytes(hidden_pad, ncls_pad))


def _choose_tk(d_in: int, hidden_pad: int, ncls_pad: int) -> int:
    """Largest 128-multiple K tile that fits the budget (collapses K if small)."""
    tk = _round_up(d_in, 128)
    while tk > 128 and _tile_vmem_bytes(_TM_MAX, tk, hidden_pad, ncls_pad) > _VMEM_TILE_BUDGET:
        tk = _round_up(tk // 2, 128)
    return tk


def _choose_tm(batch: int, tk: int, hidden_pad: int, ncls_pad: int,
               min_row_tiles: int = 1) -> int:
    """Fewest (large) 16-aligned row tiles that fit the VMEM budget.

    Fewer row tiles => w_enc (the dominant HBM stream) is re-read fewer times.
    min_row_tiles=2 can be used on v7x to keep both TensorCores busy when the
    whole batch would otherwise land in a single tile.
    """
    b16 = _round_up(batch, 16)          # bf16 packs 2 rows/sublane -> 16-row tiles
    tm_cap = _TM_MAX
    while tm_cap > 16 and _tile_vmem_bytes(tm_cap, tk, hidden_pad, ncls_pad) > _VMEM_TILE_BUDGET:
        tm_cap //= 2
    n_tiles = max(_cdiv(b16, tm_cap), min_row_tiles)
    tm = min(_round_up(_cdiv(b16, n_tiles), 16), tm_cap)
    return tm


def _clip_classifier_kernel(x_ref, w_enc_ref, b_enc_ref, w_cls_ref, b_cls_ref,
                            feat_ref, logits_ref):
    """Grid = (batch tiles, K tiles).  K (reduction) is the trailing 'arbitrary' axis.

    feat_ref doubles as the f32 accumulator: its output BlockSpec index (i, 0)
    is constant across K, so the block stays VMEM-resident for the whole K loop.
    """
    k = pl.program_id(1)

    @pl.when(k == 0)
    def _init():
        feat_ref[...] = jnp.zeros_like(feat_ref)

    # Encoder projection partial: cast the f32 activation tile to bf16 in-kernel
    # (VPU slot has slack in this MXU/DMA-bound loop), accumulate in f32.
    x_bf16 = x_ref[...].astype(jnp.bfloat16)
    feat_ref[...] += jnp.dot(x_bf16, w_enc_ref[...],
                             preferred_element_type=jnp.float32)

    @pl.when(k == pl.num_programs(1) - 1)
    def _finalize():
        feats = feat_ref[...] + b_enc_ref[...]                    # [tm, Hpad] f32
        feat_ref[...] = feats
        # Classifier head (nn.Linear): tiny VMEM-resident bf16 weight, f32 accumulate.
        logits = jnp.dot(feats.astype(jnp.bfloat16), w_cls_ref[...],
                         preferred_element_type=jnp.float32) + b_cls_ref[...]
        logits_ref[...] = logits.astype(logits_ref.dtype)


def prepare_clip_classifier_params(w_enc, b_enc, w_cls, b_cls):
    """One-time (model-init) weight cast + padding so it is not redone per call."""
    d_in, hidden = w_enc.shape
    num_classes = w_cls.shape[1]
    hidden_pad = _round_up(hidden, 128)        # lane-dense feature axis
    ncls_pad = _round_up(num_classes, 128)     # lane-dense logits axis
    tk = _choose_tk(d_in, hidden_pad, ncls_pad)
    d_in_pad = _round_up(d_in, tk)

    w_enc_p = jnp.pad(w_enc.astype(jnp.bfloat16),
                      ((0, d_in_pad - d_in), (0, hidden_pad - hidden)))
    b_enc_p = jnp.pad(b_enc.astype(jnp.float32).reshape(1, hidden),
                      ((0, 0), (0, hidden_pad - hidden)))
    w_cls_p = jnp.pad(w_cls.astype(jnp.bfloat16),
                      ((0, hidden_pad - hidden), (0, ncls_pad - num_classes)))
    b_cls_p = jnp.pad(b_cls.astype(jnp.float32).reshape(1, num_classes),
                      ((0, 0), (0, ncls_pad - num_classes)))

    return dict(w_enc=w_enc_p, b_enc=b_enc_p, w_cls=w_cls_p, b_cls=b_cls_p,
                d_in=d_in, hidden=hidden, num_classes=num_classes,
                d_in_pad=d_in_pad, hidden_pad=hidden_pad, ncls_pad=ncls_pad,
                tk=tk)


def clip_classifier_forward(images, params, *, min_row_tiles: int = 1):
    """images: [B, C, H, W] float32 (NCHW).  Returns (image_features, logits)."""
    B = images.shape[0]
    d_in = params["d_in"]
    hidden, num_classes = params["hidden"], params["num_classes"]
    d_in_pad, hidden_pad, ncls_pad = params["d_in_pad"], params["hidden_pad"], params["ncls_pad"]
    tk = params["tk"]

    tm = _choose_tm(B, tk, hidden_pad, ncls_pad, min_row_tiles)
    B_pad = tm * _cdiv(B, tm)

    # Activations stay f32 (no wrapper-side bf16 copy); only zero-padding here.
    x = images.reshape(B, d_in).astype(jnp.float32)
    x_p = jnp.pad(x, ((0, B_pad - B), (0, d_in_pad - d_in)))

    grid = (B_pad // tm, d_in_pad // tk)

    flops = 2 * B_pad * d_in_pad * hidden_pad + 2 * B_pad * hidden_pad * ncls_pad
    bytes_accessed = (x_p.size * 4                       # activations, read once
                      + grid[0] * params["w_enc"].size * 2  # w_enc streamed per row tile
                      + params["w_cls"].size * 2
                      + hidden_pad * 4 + ncls_pad * 4
                      + B_pad * hidden_pad * 4 + B_pad * ncls_pad * 4)

    vmem_limit = min(max(int(_tile_vmem_bytes(tm, tk, hidden_pad, ncls_pad) * 1.25)
                         + (1 << 20),
                         16 * 1024 * 1024),
                     100 * 1024 * 1024)

    feat_shape = jax.ShapeDtypeStruct((B_pad, hidden_pad), jnp.float32)
    logit_shape = jax.ShapeDtypeStruct((B_pad, ncls_pad), jnp.float32)

    feats_p, logits_p = pl.pallas_call(
        _clip_classifier_kernel,
        out_shape=(feat_shape, logit_shape),
        grid_spec=pltpu.PrefetchScalarGridSpec(
            num_scalar_prefetch=0,
            grid=grid,
            in_specs=[
                pl.BlockSpec((tm, tk), lambda i, k: (i, k)),                # x tile (f32)
                pl.BlockSpec((tk, hidden_pad), lambda i, k: (k, 0)),        # w_enc tile (bf16)
                pl.BlockSpec((1, hidden_pad), lambda i, k: (0, 0)),         # b_enc (resident)
                pl.BlockSpec((hidden_pad, ncls_pad), lambda i, k: (0, 0)),  # w_cls (resident, bf16)
                pl.BlockSpec((1, ncls_pad), lambda i, k: (0, 0)),           # b_cls (resident)
            ],
            out_specs=(
                pl.BlockSpec((tm, hidden_pad), lambda i, k: (i, 0)),        # feats (accumulator)
                pl.BlockSpec((tm, ncls_pad), lambda i, k: (i, 0)),          # logits
            ),
        ),
        compiler_params=pltpu.CompilerParams(
            dimension_semantics=("parallel", "arbitrary"),
            vmem_limit_bytes=vmem_limit,
        ),
        cost_estimate=pl.CostEstimate(flops=flops, transcendentals=0,
                                      bytes_accessed=bytes_accessed),
    )(x_p, params["w_enc"], params["b_enc"], params["w_cls"], params["b_cls"])

    # Slice padding back off (lane-dense compute, exact module-shaped outputs).
    return feats_p[:B, :hidden], logits_p[:B, :num_classes]


if __name__ == "__main__":
    # Small shapes consistent with the module's forward:
    #   images: [B=2, C=4, H=16, W=16], hidden_size=32, num_classes=8
    B, C, H, W = 2, 4, 16, 16
    hidden_size = 32
    num_classes = 8
    d_in = C * H * W

    key = jax.random.PRNGKey(0)
    k_img, k_we, k_be, k_wc, k_bc = jax.random.split(key, 5)

    images = jax.random.normal(k_img, (B, C, H, W), dtype=jnp.float32)

    # TODO(synk): the real clip_model.encode_image is an external CLIP vision
    # transformer; here it is replaced by a deterministic synthetic linear
    # encoder of matching output width (hidden_size).
    w_enc = jax.random.normal(k_we, (d_in, hidden_size), dtype=jnp.float32) * 0.02
    b_enc = jax.random.normal(k_be, (hidden_size,), dtype=jnp.float32) * 0.02

    # nn.Linear(hidden_size, num_classes): torch stores [out, in]; pre-transposed
    # to [in, out] so the kernel computes x @ W + b directly.
    w_cls = jax.random.normal(k_wc, (hidden_size, num_classes), dtype=jnp.float32) * 0.02
    b_cls = jax.random.normal(k_bc, (num_classes,), dtype=jnp.float32) * 0.02

    params = prepare_clip_classifier_params(w_enc, b_enc, w_cls, b_cls)
    feats, logits = clip_classifier_forward(images, params)
    jax.block_until_ready((feats, logits))

    assert feats.shape == (B, hidden_size) and logits.shape == (B, num_classes)

    # Reference matching the kernel's bf16-operand / f32-accumulate numerics.
    x_bf = images.reshape(B, d_in).astype(jnp.bfloat16).astype(jnp.float32)
    we_bf = w_enc.astype(jnp.bfloat16).astype(jnp.float32)
    wc_bf = w_cls.astype(jnp.bfloat16).astype(jnp.float32)
    ref_feats = jnp.dot(x_bf, we_bf, precision=jax.lax.Precision.HIGHEST) + b_enc
    ref_logits = jnp.dot(ref_feats.astype(jnp.bfloat16).astype(jnp.float32), wc_bf,
                         precision=jax.lax.Precision.HIGHEST) + b_cls
    assert jnp.allclose(feats, ref_feats, atol=5e-3, rtol=5e-3)
    assert jnp.allclose(logits, ref_logits, atol=5e-3, rtol=5e-3)

    # Full-precision f32 reference (looser tol: operands were rounded to bf16).
    f32_feats = jnp.dot(images.reshape(B, d_in), w_enc,
                        precision=jax.lax.Precision.HIGHEST) + b_enc
    f32_logits = jnp.dot(f32_feats, w_cls,
                         precision=jax.lax.Precision.HIGHEST) + b_cls
    assert jnp.allclose(feats, f32_feats, atol=5e-2, rtol=5e-2)
    assert jnp.allclose(logits, f32_logits, atol=5e-2, rtol=5e-2)

    print("KERNEL_OK")
</pallas_src>

<mosaic_0001>
module attributes {stable_mosaic.version = 11 : i64} {
  func.func @_clip_classifier_kernel(%arg0: i32, %arg1: i32, %arg2: memref<16x1024xf32, #tpu.memory_space<vmem>>, %arg3: memref<1024x128xbf16, #tpu.memory_space<vmem>>, %arg4: memref<1x128xf32, #tpu.memory_space<vmem>>, %arg5: memref<128x128xbf16, #tpu.memory_space<vmem>>, %arg6: memref<1x128xf32, #tpu.memory_space<vmem>>, %arg7: memref<16x128xf32, #tpu.memory_space<vmem>>, %arg8: memref<16x128xf32, #tpu.memory_space<vmem>>) attributes {dimension_semantics = [#tpu.dimension_semantics<parallel>, #tpu.dimension_semantics<arbitrary>], iteration_bounds = array<i64: 1, 1>, scalar_prefetch = 0 : i64, scratch_operands = 0 : i64, tpu.core_type = #tpu.core_type<tc>, window_params = [{transform_indices = @transform_0, window_bounds = array<i64: 16, 1024>}, {transform_indices = @transform_1, window_bounds = array<i64: 1024, 128>}, {pipeline_mode = #tpu.pipeline_mode<synchronous>, transform_indices = @transform_2, window_bounds = array<i64: 1, 128>}, {pipeline_mode = #tpu.pipeline_mode<synchronous>, transform_indices = @transform_3, window_bounds = array<i64: 128, 128>}, {pipeline_mode = #tpu.pipeline_mode<synchronous>, transform_indices = @transform_4, window_bounds = array<i64: 1, 128>}, {transform_indices = @transform_5, window_bounds = array<i64: 16, 128>}, {transform_indices = @transform_6, window_bounds = array<i64: 16, 128>}]} {
    %c0_i32 = arith.constant 0 : i32
    %0 = arith.cmpi eq, %arg1, %c0_i32 : i32
    %1 = arith.extui %0 : i1 to i32
    %c0_i32_0 = arith.constant 0 : i32
    %2 = arith.cmpi ne, %1, %c0_i32_0 : i32
    scf.if %2 {
      %cst_10 = arith.constant 0.000000e+00 : f32
      %13 = vector.broadcast %cst_10 : f32 to vector<16x128xf32>
      %c0_11 = arith.constant 0 : index
      %c0_12 = arith.constant 0 : index
      %14 = vector.load %arg7[%c0_11, %c0_12] : memref<16x128xf32, #tpu.memory_space<vmem>>, vector<16x128xf32>
      tpu.vector_store %arg7[%c0_11, %c0_12], %13 {strides = array<i32>} : memref<16x128xf32, #tpu.memory_space<vmem>>, vector<16x128xf32>,
    } else {
    }
    %c0 = arith.constant 0 : index
    %c0_1 = arith.constant 0 : index
    %3 = vector.load %arg2[%c0, %c0_1] : memref<16x1024xf32, #tpu.memory_space<vmem>>, vector<16x1024xf32>
    %4 = arith.truncf %3 : vector<16x1024xf32> to vector<16x1024xbf16>
    %c0_2 = arith.constant 0 : index
    %c0_3 = arith.constant 0 : index
    %5 = vector.load %arg7[%c0_2, %c0_3] : memref<16x128xf32, #tpu.memory_space<vmem>>, vector<16x128xf32>
    %c0_4 = arith.constant 0 : index
    %c0_5 = arith.constant 0 : index
    %6 = vector.load %arg3[%c0_4, %c0_5] : memref<1024x128xbf16, #tpu.memory_space<vmem>>, vector<1024x128xbf16>
    %cst = arith.constant dense<0.000000e+00> : vector<16x128xf32>
    %7 = tpu.matmul %4, %6, %cst {dimension_numbers = #tpu.dot_dimension_numbers<[1], [0], [0], [1], [0, 0, 1, 1], [], []>} : vector<16x1024xbf16>, vector<1024x128xbf16>, vector<16x128xf32> -> vector<16x128xf32>
    %8 = arith.addf %5, %7 : vector<16x128xf32>
    %c0_6 = arith.constant 0 : index
    %c0_7 = arith.constant 0 : index
    %9 = vector.load %arg7[%c0_6, %c0_7] : memref<16x128xf32, #tpu.memory_space<vmem>>, vector<16x128xf32>
    tpu.vector_store %arg7[%c0_6, %c0_7], %8 {strides = array<i32>} : memref<16x128xf32, #tpu.memory_space<vmem>>, vector<16x128xf32>,
    %c0_i32_8 = arith.constant 0 : i32
    %10 = arith.cmpi eq, %arg1, %c0_i32_8 : i32
    %11 = arith.extui %10 : i1 to i32
    %c0_i32_9 = arith.constant 0 : i32
    %12 = arith.cmpi ne, %11, %c0_i32_9 : i32
    scf.if %12 {
      %c0_10 = arith.constant 0 : index
      %c0_11 = arith.constant 0 : index
      %13 = vector.load %arg7[%c0_10, %c0_11] : memref<16x128xf32, #tpu.memory_space<vmem>>, vector<16x128xf32>
      %c0_12 = arith.constant 0 : index
      %c0_13 = arith.constant 0 : index
      %14 = vector.load %arg4[%c0_12, %c0_13] : memref<1x128xf32, #tpu.memory_space<vmem>>, vector<1x128xf32>
      %15 = vector.broadcast %14 : vector<1x128xf32> to vector<16x128xf32>
      %16 = arith.addf %13, %15 : vector<16x128xf32>
      %c0_14 = arith.constant 0 : index
      %c0_15 = arith.constant 0 : index
      %17 = vector.load %arg7[%c0_14, %c0_15] : memref<16x128xf32, #tpu.memory_space<vmem>>, vector<16x128xf32>
      tpu.vector_store %arg7[%c0_14, %c0_15], %16 {strides = array<i32>} : memref<16x128xf32, #tpu.memory_space<vmem>>, vector<16x128xf32>,
      %18 = arith.truncf %16 : vector<16x128xf32> to vector<16x128xbf16>
      %c0_16 = arith.constant 0 : index
      %c0_17 = arith.constant 0 : index
      %19 = vector.load %arg5[%c0_16, %c0_17] : memref<128x128xbf16, #tpu.memory_space<vmem>>, vector<128x128xbf16>
      %cst_18 = arith.constant dense<0.000000e+00> : vector<16x128xf32>
      %20 = tpu.matmul %18, %19, %cst_18 {dimension_numbers = #tpu.dot_dimension_numbers<[1], [0], [0], [1], [0, 0, 1, 1], [], []>} : vector<16x128xbf16>, vector<128x128xbf16>, vector<16x128xf32> -> vector<16x128xf32>
      %c0_19 = arith.constant 0 : index
      %c0_20 = arith.constant 0 : index
      %21 = vector.load %arg6[%c0_19, %c0_20] : memref<1x128xf32, #tpu.memory_space<vmem>>, vector<1x128xf32>
      %22 = vector.broadcast %21 : vector<1x128xf32> to vector<16x128xf32>
      %23 = arith.addf %20, %22 : vector<16x128xf32>
      %c0_21 = arith.constant 0 : index
      %c0_22 = arith.constant 0 : index
      %24 = vector.load %arg8[%c0_21, %c0_22] : memref<16x128xf32, #tpu.memory_space<vmem>>, vector<16x128xf32>
      tpu.vector_store %arg8[%c0_21, %c0_22], %23 {strides = array<i32>} : memref<16x128xf32, #tpu.memory_space<vmem>>, vector<16x128xf32>,
    } else {
    }
    return
  }
  func.func @transform_0(%arg0: i32, %arg1: i32) -> (i32, i32) {
    %c0_i32 = arith.constant 0 : i32
    return %arg0, %arg1 : i32, i32
  }
  func.func @transform_1(%arg0: i32, %arg1: i32) -> (i32, i32) {
    %c0_i32 = arith.constant 0 : i32
    %c0_i32_0 = arith.constant 0 : i32
    return %arg1, %c0_i32 : i32, i32
  }
  func.func @transform_2(%arg0: i32, %arg1: i32) -> (i32, i32) {
    %c0_i32 = arith.constant 0 : i32
    %c0_i32_0 = arith.constant 0 : i32
    %c0_i32_1 = arith.constant 0 : i32
    return %c0_i32, %c0_i32_0 : i32, i32
  }
  func.func @transform_3(%arg0: i32, %arg1: i32) -> (i32, i32) {
    %c0_i32 = arith.constant 0 : i32
    %c0_i32_0 = arith.constant 0 : i32
    %c0_i32_1 = arith.constant 0 : i32
    return %c0_i32, %c0_i32_0 : i32, i32
  }
  func.func @transform_4(%arg0: i32, %arg1: i32) -> (i32, i32) {
    %c0_i32 = arith.constant 0 : i32
    %c0_i32_0 = arith.constant 0 : i32
    %c0_i32_1 = arith.constant 0 : i32
    return %c0_i32, %c0_i32_0 : i32, i32
  }
  func.func @transform_5(%arg0: i32, %arg1: i32) -> (i32, i32) {
    %c0_i32 = arith.constant 0 : i32
    %c0_i32_0 = arith.constant 0 : i32
    return %arg0, %c0_i32 : i32, i32
  }
  func.func @transform_6(%arg0: i32, %arg1: i32) -> (i32, i32) {
    %c0_i32 = arith.constant 0 : i32
    %c0_i32_0 = arith.constant 0 : i32
    return %arg0, %c0_i32 : i32, i32
  }
}

</mosaic_0001>

<bundles_post_ra>
// kernel: tpu_custom_call.1
= control target key start
LH: loop header
LB: loop body
LE: loop exit
PB: predicated region body
PF: predicated region fallthrough
CT: control target
= control target key end

     0   :  { %12 = vsyncpa [#allocation3], 0  ;;  %s1462_s0 = inlined_call_operand.hbm [shape: f32[16,1024], index: 0, kind: input, shape index: {}]   ;;  %s1463_s1 = inlined_call_operand.hbm [shape: bf16[1024,128], index: 1, kind: input, shape index: {}]   ;;  %s1464_s2 = inlined_call_operand.vmem [shape: f32[1,128], index: 2, kind: input, shape index: {}]   ;;  %s1465_s3 = inlined_call_operand.hbm [shape: bf16[128,128], index: 3, kind: input, shape index: {}]   ;;  %s1466_s4 = inlined_call_operand.vmem [shape: f32[1,128], index: 4, kind: input, shape index: {}]   ;;  %s1467_s5 = inlined_call_operand.hbm [shape: f32[16,128], index: 5, kind: output, shape index: {0}]   ;;  %s1468_s6 = inlined_call_operand.hbm [shape: f32[16,128], index: 6, kind: output, shape index: {1}]  }
   0x1   :  { %13 = vsyncpa [#allocation6], 0 }
   0x2   :  { %14 = vsyncpa [#allocation4], 0 }
   0x3   :  { %15 = vsyncpa [#allocation10], 0  ;;  %s1336_s21 = smov [#allocation5]   ;;  %s1218_s25 = scalar_lea.hbm %s1463_s1, 8192 }
   0x4   :  { %s33_s22 = sshll.u32 %s1336_s21, 4  ;;  %p1219_p0 = scmp.ne.s32.totalorder %s1463_s1, %s1218_s25  ;;  %s34_s22 = int_to_ptr.vmem [resolvable:$true] %s33_s22 }
   0x5   :  { %p1222_p1 = scmp.lt.u32.totalorder %s1218_s25, %s1463_s1 }
   0x7   :  { %p1224_p2 = pnand %p1222_p1, %p1219_p0 }
   0x9   :  { %1227 = shalt.err (!%p1224_p2)
}
   0xa   :  { %s1228_s30 = scalar_lea.vmem %s34_s22, 8192  ;;  %p1233_p4 = scmp.lt.s32.totalorder %s34_s22, %s34_s22 }
   0xb   :  { %p1229_p3 = scmp.ne.s32.totalorder %s34_s22, %s1228_s30  ;;  %p1234_p5 = scmp.lt.s32.totalorder %s1228_s30, %s1228_s30 }
   0xd   :  { %p1235_p6 = por %p1234_p5, %p1233_p4 }
   0xf   :  { %p1236_p7 = pnand %p1235_p6, %p1229_p3 }
  0x11   :  { %1239 = shalt.err (!%p1236_p7)
}
  0x12   :  { %s1337_s7 = smov 64   ;;  %s1338_s8 = smov 4  }
  0x13   :  { %39 = dma.hbm_to_vmem [thread:$0]  %s1463_s1, 8192, %s34_s22, [#allocation6], %s1337_s7, %s1337_s7, %s1338_s8  }
  0x14   :  { %s1339_s11 = smov [#allocation2]   ;;  %s1240_s15 = scalar_lea.hbm %s1462_s0, 2048 }
  0x15   :  { %s21_s12 = sshll.u32 %s1339_s11, 4  ;;  %p1241_p8 = scmp.ne.s32.totalorder %s1462_s0, %s1240_s15  ;;  %s22_s12 = int_to_ptr.vmem [resolvable:$true] %s21_s12 }
  0x16   :  { %p1244_p9 = scmp.lt.u32.totalorder %s1240_s15, %s1462_s0 }
  0x18   :  { %p1246_p10 = pnand %p1244_p9, %p1241_p8 }
  0x1a   :  { %1249 = shalt.err (!%p1246_p10)
}
  0x1b   :  { %s1250_s20 = scalar_lea.vmem %s22_s12, 2048  ;;  %p1255_p12 = scmp.lt.s32.totalorder %s22_s12, %s22_s12 }
  0x1c   :  { %p1251_p11 = scmp.ne.s32.totalorder %s22_s12, %s1250_s20  ;;  %p1256_p13 = scmp.lt.s32.totalorder %s1250_s20, %s1250_s20 }
  0x1e   :  { %p1257_p0 = por %p1256_p13, %p1255_p12 }
  0x20   :  { %p1258_p1 = pnand %p1257_p0, %p1251_p11 }
  0x22   :  { %1261 = shalt.err (!%p1258_p1)
}
  0x23   :  { %s1340_s1 = smov 1024   ;;  %s1341_s23 = smov [#allocation7]  }
  0x24   :  { %27 = dma.hbm_to_vmem [thread:$0]  %s1462_s0, 2048, %s22_s12, [#allocation3], %s1340_s1, %s1340_s1, %s1337_s7  }
  0x25   :  { %s47_s24 = sshll.u32 %s1341_s23, 4  ;;  %s1262_s27 = scalar_lea.hbm %s1465_s3, 1024  ;;  %s48_s24 = int_to_ptr.vmem [resolvable:$true] %s47_s24 }
  0x26   :  { %p1263_p2 = scmp.ne.s32.totalorder %s1465_s3, %s1262_s27  ;;  %p1266_p3 = scmp.lt.u32.totalorder %s1262_s27, %s1465_s3 }
  0x28   :  { %p1268_p4 = pnand %p1266_p3, %p1263_p2 }
  0x2a   :  { %1271 = shalt.err (!%p1268_p4)
}
  0x2b   :  { %s1272_s10 = scalar_lea.vmem %s48_s24, 1024  ;;  %p1277_p6 = scmp.lt.s32.totalorder %s48_s24, %s48_s24 }
  0x2c   :  { %p1273_p5 = scmp.ne.s32.totalorder %s48_s24, %s1272_s10  ;;  %p1278_p7 = scmp.lt.s32.totalorder %s1272_s10, %s1272_s10 }
  0x2e   :  { %p1279_p8 = por %p1278_p7, %p1277_p6 }
  0x30   :  { %p1280_p9 = pnand %p1279_p8, %p1273_p5 }
  0x32   :  { %1283 = shalt.err (!%p1280_p9)
}
  0x33   :  { %53 = dma.hbm_to_vmem [thread:$0]  %s1465_s3, 1024, %s48_s24, [#allocation6], %s1337_s7, %s1337_s7, %s1338_s8  }
  0x34   :  { %1328 = dma.done.wait [#allocation3], 2048  }
  0x35   :  { %1329 = vsyncadd [#allocation3], 4294965248 }
  0x36   :  { %1330 = dma.done.wait [#allocation6], 9216  }
  0x37   :  { %1331 = vsyncadd [#allocation6], 4294958080  ;;  %v1146_v0 = vld [vmem:[#allocation5 + $0x40] sm:$0xff]   ;;  %v1150_v4 = vld [vmem:[#allocation5 + $0x48] sm:$0xff]   ;;  %vm1343_vm0 = vmmov 0   ;;  %s1344_s8 = smov [#allocation8]  }
  0x38   :  { %v1147_v1 = vld [vmem:[#allocation5 + $0xc0] sm:$0xff]   ;;  %1017 = vmatprep.subr.bf16.mxu0 %v1146_v0  ;;  %v1151_v5 = vld [vmem:[#allocation5 + $0xc8] sm:$0xff]   ;;  %v1154_v8 = vld [vmem:[#allocation5 + $0x50] sm:$0xff]   ;;  %s914_s12 = sshll.u32 %s1344_s8, 4  ;;  %s915_s12 = int_to_ptr.vmem [resolvable:$true] %s914_s12 }
  0x39   :  { %v1148_v2 = vld [vmem:[#allocation5] sm:$0xff]   ;;  %1039 = vmatprep.subr.bf16.mxu1 %v1147_v1  ;;  %v1152_v6 = vld [vmem:[#allocation5 + $0x8] sm:$0xff]   ;;  %v1155_v9 = vld [vmem:[#allocation5 + $0xd0] sm:$0xff]   ;;  %s1284_s13 = scalar_lea.vmem %s915_s12, 256  ;;  %p1289_p11 = scmp.lt.s32.totalorder %s915_s12, %s915_s12 }
  0x3a   :  { %v1149_v3 = vld [vmem:[#allocation5 + $0x80] sm:$0xff]   ;;  %1018 = vmatpush3.bf16.msra.mxu0 %v1148_v2  ;;  %v1153_v7 = vld [vmem:[#allocation5 + $0x88] sm:$0xff]   ;;  %v1156_v10 = vld [vmem:[#allocation5 + $0x10] sm:$0xff]   ;;  %p1285_p10 = scmp.ne.s32.totalorder %s915_s12, %s1284_s13  ;;  %p1290_p12 = scmp.lt.s32.totalorder %s1284_s13, %s1284_s13 }
  0x3b   :  { %1040 = vmatpush3.bf16.msra.mxu1 %v1149_v3  ;;  %1019 = vmatprep.subr.bf16.mxu0 %v1150_v4  ;;  %v1157_v11 = vld [vmem:[#allocation5 + $0x90] sm:$0xff]   ;;  %v1158_v12 = vld [vmem:[#allocation5 + $0x58] sm:$0xff]   ;;  %v1162_v16 = vld [vmem:[#allocation5 + $0x60] sm:$0xff]  }
  0x3c   :  { %1041 = vmatprep.subr.bf16.mxu1 %v1151_v5  ;;  %v1159_v13 = vld [vmem:[#allocation5 + $0xd8] sm:$0xff]   ;;  %v1163_v17 = vld [vmem:[#allocation5 + $0xe0] sm:$0xff]   ;;  %v1166_v20 = vld [vmem:[#allocation5 + $0x68] sm:$0xff]   ;;  %p1291_p13 = por %p1290_p12, %p1289_p11 }
  0x3d   :  { %v1160_v14 = vld [vmem:[#allocation5 + $0x18] sm:$0xff]   ;;  %v1164_v18 = vld [vmem:[#allocation5 + $0x20] sm:$0xff]   ;;  %v1167_v21 = vld [vmem:[#allocation5 + $0xe8] sm:$0xff]  }
  0x3e   :  { %1020 = vmatpush3.bf16.msra.mxu0 %v1152_v6  ;;  %v1161_v15 = vld [vmem:[#allocation5 + $0x98] sm:$0xff]   ;;  %v1165_v19 = vld [vmem:[#allocation5 + $0xa0] sm:$0xff]   ;;  %v1168_v22 = vld [vmem:[#allocation5 + $0x28] sm:$0xff]   ;;  %p1292_p0 = pnand %p1291_p13, %p1285_p10 }
  0x3f   :  { %1042 = vmatpush3.bf16.msra.mxu1 %v1153_v7  ;;  %1021 = vmatprep.subr.bf16.mxu0 %v1154_v8  ;;  %v1169_v23 = vld [vmem:[#allocation5 + $0xa8] sm:$0xff]   ;;  %v1170_v24 = vld [vmem:[#allocation5 + $0x70] sm:$0xff]   ;;  %v1174_v28 = vld [vmem:[#allocation5 + $0x78] sm:$0xff]  }
  0x40   :  { %1043 = vmatprep.subr.bf16.mxu1 %v1155_v9  ;;  %v1171_v25 = vld [vmem:[#allocation5 + $0xf0] sm:$0xff]   ;;  %v1175_v29 = vld [vmem:[#allocation5 + $0xf8] sm:$0xff]   ;;  %v73_v32 = vld [vmem:[#allocation2 + $0x8] sm:$0xff] }
  0x41   :  { %v1172_v26 = vld [vmem:[#allocation5 + $0x30] sm:$0xff]   ;;  %v1176_v30 = vld [vmem:[#allocation5 + $0x38] sm:$0xff]   ;;  %v81_v33 = vld [vmem:[#allocation2 + $0x48] sm:$0xff] }
  0x42   :  { %1022 = vmatpush3.bf16.msra.mxu0 %v1156_v10  ;;  %v1173_v27 = vld [vmem:[#allocation5 + $0xb0] sm:$0xff]   ;;  %v1177_v31 = vld [vmem:[#allocation5 + $0xb8] sm:$0xff]   ;;  %v89_v35 = vpack.c.bf16 %v81_v33, %v73_v32  ;;  %v72_v37 = vld [vmem:[#allocation2] sm:$0xff] }
  0x43   :  { %1044 = vmatpush3.bf16.msra.mxu1 %v1157_v11  ;;  %1023 = vmatprep.subr.bf16.mxu0 %v1158_v12  ;;  %v75_v34 = vld [vmem:[#allocation2 + $0x18] sm:$0xff]  ;;  %v80_v38 = vld [vmem:[#allocation2 + $0x40] sm:$0xff]  ;;  %v74_v41 = vld [vmem:[#allocation2 + $0x10] sm:$0xff] }
  0x44   :  { %1045 = vmatprep.subr.bf16.mxu1 %v1159_v13  ;;  %v83_v36 = vld [vmem:[#allocation2 + $0x58] sm:$0xff]  ;;  %v88_v40 = vpack.c.bf16 %v80_v38, %v72_v37  ;;  %v82_v42 = vld [vmem:[#allocation2 + $0x50] sm:$0xff]  ;;  %642 = vmatprep.mubr.bf16.mxu0 %v89_v35  ;;  %v1178_v44 = vld [vmem:[#allocation5 + $0x140] sm:$0xff]  }
  0x45   :  { %v91_v39 = vpack.c.bf16 %v83_v36, %v75_v34  ;;  %v90_v43 = vpack.c.bf16 %v82_v42, %v74_v41  ;;  %v1179_v45 = vld [vmem:[#allocation5 + $0x1c0] sm:$0xff]   ;;  %v1182_v48 = vld [vmem:[#allocation5 + $0x148] sm:$0xff]   ;;  %v1186_v52 = vld [vmem:[#allocation5 + $0x150] sm:$0xff]  }
  0x46   :  { %1024 = vmatpush3.bf16.msra.mxu0 %v1160_v14  ;;  %v1180_v46 = vld [vmem:[#allocation5 + $0x100] sm:$0xff]   ;;  %v1183_v49 = vld [vmem:[#allocation5 + $0x1c8] sm:$0xff]   ;;  %v1187_v53 = vld [vmem:[#allocation5 + $0x1d0] sm:$0xff]  }
  0x47   :  { %1046 = vmatpush3.bf16.msra.mxu1 %v1161_v15  ;;  %1025 = vmatprep.subr.bf16.mxu0 %v1162_v16  ;;  %v1181_v47 = vld [vmem:[#allocation5 + $0x180] sm:$0xff]   ;;  %v1184_v50 = vld [vmem:[#allocation5 + $0x108] sm:$0xff]   ;;  %v1188_v54 = vld [vmem:[#allocation5 + $0x110] sm:$0xff]  }
  0x48   :  { %1047 = vmatprep.subr.bf16.mxu1 %v1163_v17  ;;  %683 = vmatprep.mubr.bf16.mxu1 %v91_v39  ;;  %v1185_v51 = vld [vmem:[#allocation5 + $0x188] sm:$0xff]   ;;  %v1189_v55 = vld [vmem:[#allocation5 + $0x190] sm:$0xff]   ;;  %v1190_v56 = vld [vmem:[#allocation5 + $0x158] sm:$0xff]  }
  0x49   :  { %v1191_v57 = vld [vmem:[#allocation5 + $0x1d8] sm:$0xff]   ;;  %v1194_v60 = vld [vmem:[#allocation5 + $0x160] sm:$0xff]   ;;  %v1198_v0 = vld [vmem:[#allocation5 + $0x168] sm:$0xff]  }
  0x4a   :  { %1026 = vmatpush3.bf16.msra.mxu0 %v1164_v18  ;;  %v1192_v58 = vld [vmem:[#allocation5 + $0x118] sm:$0xff]   ;;  %v1195_v61 = vld [vmem:[#allocation5 + $0x1e0] sm:$0xff]   ;;  %v1199_v1 = vld [vmem:[#allocation5 + $0x1e8] sm:$0xff]  }
  0x4b   :  { %1048 = vmatpush3.bf16.msra.mxu1 %v1165_v19  ;;  %1027 = vmatprep.subr.bf16.mxu0 %v1166_v20  ;;  %v1193_v59 = vld [vmem:[#allocation5 + $0x198] sm:$0xff]   ;;  %v1196_v62 = vld [vmem:[#allocation5 + $0x120] sm:$0xff]   ;;  %v1200_v2 = vld [vmem:[#allocation5 + $0x128] sm:$0xff]  }
  0x4c   :  { %1049 = vmatprep.subr.bf16.mxu1 %v1167_v21  ;;  %v1197_v63 = vld [vmem:[#allocation5 + $0x1a0] sm:$0xff]   ;;  %v1201_v3 = vld [vmem:[#allocation5 + $0x1a8] sm:$0xff]   ;;  %v1202_v4 = vld [vmem:[#allocation5 + $0x170] sm:$0xff]  }
  0x4d   :  { %v1203_v5 = vld [vmem:[#allocation5 + $0x1f0] sm:$0xff]   ;;  %v1206_v8 = vld [vmem:[#allocation5 + $0x178] sm:$0xff]   ;;  %v77_v12 = vld [vmem:[#allocation2 + $0x28] sm:$0xff] }
  0x4e   :  { %1028 = vmatpush3.bf16.msra.mxu0 %v1168_v22  ;;  %v1204_v6 = vld [vmem:[#allocation5 + $0x130] sm:$0xff]   ;;  %v1207_v9 = vld [vmem:[#allocation5 + $0x1f8] sm:$0xff]   ;;  %v85_v13 = vld [vmem:[#allocation2 + $0x68] sm:$0xff] }
  0x4f   :  { %1050 = vmatpush3.bf16.msra.mxu1 %v1169_v23  ;;  %1029 = vmatprep.subr.bf16.mxu0 %v1170_v24  ;;  %v1205_v7 = vld [vmem:[#allocation5 + $0x1b0] sm:$0xff]   ;;  %v1208_v10 = vld [vmem:[#allocation5 + $0x138] sm:$0xff]   ;;  %v93_v16 = vpack.c.bf16 %v85_v13, %v77_v12  ;;  %v76_v18 = vld [vmem:[#allocation2 + $0x20] sm:$0xff] }
  0x50   :  { %1051 = vmatprep.subr.bf16.mxu1 %v1171_v25  ;;  %v1209_v11 = vld [vmem:[#allocation5 + $0x1b8] sm:$0xff]   ;;  %v84_v19 = vld [vmem:[#allocation2 + $0x60] sm:$0xff]  ;;  %v78_v20 = vld [vmem:[#allocation2 + $0x30] sm:$0xff]  ;;  %v1342_v25 = vmov 0.0  }
  0x51   :  { %v79_v14 = vld [vmem:[#allocation2 + $0x38] sm:$0xff]  ;;  %v92_v21 = vpack.c.bf16 %v84_v19, %v76_v18  ;;  %v86_v22 = vld [vmem:[#allocation2 + $0x70] sm:$0xff]  ;;  %v1210_v24 = vld [vmem:[#allocation7] sm:$0xff]  }
  0x52   :  { %1030 = vmatpush3.bf16.msra.mxu0 %v1172_v26  ;;  %v87_v15 = vld [vmem:[#allocation2 + $0x78] sm:$0xff]  ;;  %v94_v23 = vpack.c.bf16 %v86_v22, %v78_v20  ;;  %v1211_v26 = vld [vmem:[#allocation7 + $0x8] sm:$0xff]  }
  0x53   :  { %1052 = vmatpush3.bf16.msra.mxu1 %v1173_v27  ;;  %1031 = vmatprep.subr.bf16.mxu0 %v1174_v28  ;;  %v95_v17 = vpack.c.bf16 %v87_v15, %v79_v14  ;;  %v1212_v27 = vld [vmem:[#allocation7 + $0x10] sm:$0xff]   ;;  %v1213_v28 = vld [vmem:[#allocation7 + $0x18] sm:$0xff]  }
  0x54   :  { %1053 = vmatprep.subr.bf16.mxu1 %v1175_v29  ;;  %v1214_v29 = vld [vmem:[#allocation7 + $0x20] sm:$0xff]   ;;  %v1217_v32 = vld [vmem:[#allocation7 + $0x38] sm:$0xff]  }
  0x56   :  { %1032 = vmatpush3.bf16.msra.mxu0 %v1176_v30  ;;  %v1215_v30 = vld [vmem:[#allocation7 + $0x28] sm:$0xff]  }
  0x57   :  { %1054 = vmatpush3.bf16.msra.mxu1 %v1177_v31  ;;  %1061 = vmatprep.subr.bf16.mxu0 %v1178_v44  ;;  %v1216_v31 = vld [vmem:[#allocation7 + $0x30] sm:$0xff]  }
  0x58   :  { %1083 = vmatprep.subr.bf16.mxu1 %v1179_v45 }
  0x59   :  { %643 = vmatmul.mubr.bf16.vlgmr.msra.gmra.mrb[0].mxu0 %v88_v40 }
  0x5a   :  { %684 = vmatmul.mubr.bf16.vlgmr.msra.gmra.mrb[0].mxu1 %v90_v43  ;;  %1062 = vmatpush3.bf16.msra.mxu0 %v1180_v46 }
  0x5b   :  { %1084 = vmatpush3.bf16.msra.mxu1 %v1181_v47  ;;  %1063 = vmatprep.subr.bf16.mxu0 %v1182_v48 }
  0x5c   :  { %1085 = vmatprep.subr.bf16.mxu1 %v1183_v49  ;;  %724 = vmatprep.mubr.bf16.mxu0 %v93_v16 }
  0x5d   :  { %765 = vmatprep.mubr.bf16.mxu1 %v95_v17 }
  0x5e   :  { %1064 = vmatpush3.bf16.msra.mxu0 %v1184_v50 }
  0x5f   :  { %1086 = vmatpush3.bf16.msra.mxu1 %v1185_v51  ;;  %1065 = vmatprep.subr.bf16.mxu0 %v1186_v52 }
  0x60   :  { %1087 = vmatprep.subr.bf16.mxu1 %v1187_v53 }
  0x62   :  { %1066 = vmatpush3.bf16.msra.mxu0 %v1188_v54 }
  0x63   :  { %1088 = vmatpush3.bf16.msra.mxu1 %v1189_v55  ;;  %1067 = vmatprep.subr.bf16.mxu0 %v1190_v56 }
  0x64   :  { %1089 = vmatprep.subr.bf16.mxu1 %v1191_v57 }
  0x66   :  { %1068 = vmatpush3.bf16.msra.mxu0 %v1192_v58 }
  0x67   :  { %1090 = vmatpush3.bf16.msra.mxu1 %v1193_v59  ;;  %1069 = vmatprep.subr.bf16.mxu0 %v1194_v60 }
  0x68   :  { %1091 = vmatprep.subr.bf16.mxu1 %v1195_v61 }
  0x6a   :  { %1070 = vmatpush3.bf16.msra.mxu0 %v1196_v62  ;;  %v1007_v62 = vld [vmem:[%s1464_s2] ss:$0 sm:$0xff] }
  0x6b   :  { %1092 = vmatpush3.bf16.msra.mxu1 %v1197_v63  ;;  %1071 = vmatprep.subr.bf16.mxu0 %v1198_v0 }
  0x6c   :  { %1093 = vmatprep.subr.bf16.mxu1 %v1199_v1 }
  0x6e   :  { %1072 = vmatpush3.bf16.msra.mxu0 %v1200_v2 }
  0x6f   :  { %1094 = vmatpush3.bf16.msra.mxu1 %v1201_v3  ;;  %1073 = vmatprep.subr.bf16.mxu0 %v1202_v4 }
  0x70   :  { %1095 = vmatprep.subr.bf16.mxu1 %v1203_v5 }
  0x72   :  { %1074 = vmatpush3.bf16.msra.mxu0 %v1204_v6 }
  0x73   :  { %1096 = vmatpush3.bf16.msra.mxu1 %v1205_v7  ;;  %1075 = vmatprep.subr.bf16.mxu0 %v1206_v8 }
  0x74   :  { %1097 = vmatprep.subr.bf16.mxu1 %v1207_v9 }
  0x76   :  { %1076 = vmatpush3.bf16.msra.mxu0 %v1208_v10 }
  0x77   :  { %1098 = vmatpush3.bf16.msra.mxu1 %v1209_v11  ;;  %1114 = vmatprep.subr.bf16.mxu0 %v1342_v25 }
  0x79   :  { %725 = vmatmul.mubr.bf16.vlgmr.msra.gmra.mrb[4].mxu0 %v92_v21 }
  0x7a   :  { %766 = vmatmul.mubr.bf16.vlgmr.msra.gmra.mrb[4].mxu1 %v94_v23  ;;  %1115 = vmatpush3.bf16.msra.mxu0 %v1210_v24 }
  0x7b   :  { %1116 = vmatprep.subr.bf16.mxu0 %v1342_v25  ;;  %1130 = vmatprep.mubr.msk.bf16.mxu0 %vm1343_vm0, %v1342_v25 }
  0x7e   :  { %1117 = vmatpush3.bf16.msra.mxu0 %v1211_v26 }
  0x7f   :  { %1118 = vmatprep.subr.bf16.mxu0 %v1342_v25 }
  0x82   :  { %1119 = vmatpush3.bf16.msra.mxu0 %v1212_v27 }
  0x83   :  { %1120 = vmatprep.subr.bf16.mxu0 %v1342_v25 }
  0x86   :  { %1121 = vmatpush3.bf16.msra.mxu0 %v1213_v28 }
  0x87   :  { %1122 = vmatprep.subr.bf16.mxu0 %v1342_v25 }
  0x8a   :  { %1123 = vmatpush3.bf16.msra.mxu0 %v1214_v29 }
  0x8b   :  { %1124 = vmatprep.subr.bf16.mxu0 %v1342_v25 }
  0x8e   :  { %1125 = vmatpush3.bf16.msra.mxu0 %v1215_v30 }
  0x8f   :  { %1126 = vmatprep.subr.bf16.mxu0 %v1342_v25 }
  0x92   :  { %1127 = vmatpush3.bf16.msra.mxu0 %v1216_v31 }
  0x93   :  { %1128 = vmatprep.subr.bf16.mxu0 %v1342_v25 }
  0x96   :  { %1129 = vmatpush3.bf16.msra.mxu0 %v1217_v32 }
 0x12c   :  { %v1033_v33 = vpop.f32.mrb[0].mxu0 }
 0x12d   :  { %v1055_v34 = vpop.f32.mrb[0].mxu1  ;;  %v1034_v35 = vpop.f32.mrb[1].mxu0 }
 0x12e   :  { %v1035_v36 = vadd.f32 %v1034_v35, %v1033_v33  ;;  %v1056_v37 = vpop.f32.mrb[1].mxu1  ;;  %v1036_v38 = vpop.f32.mrb[2].mxu0 }
 0x12f   :  { %v1057_v39 = vadd.f32 %v1056_v37, %v1055_v34  ;;  %v1058_v40 = vpop.f32.mrb[2].mxu1  ;;  %v1037_v41 = vpop.f32.mrb[3].mxu0 }
 0x130   :  { %v1038_v42 = vadd.f32 %v1037_v41, %v1036_v38  ;;  %v1059_v43 = vpop.f32.mrb[3].mxu1 }
 0x131   :  { %v686_v44 = vadd.f32 %v1057_v39, %v1035_v36  ;;  %v1060_v45 = vadd.f32 %v1059_v43, %v1058_v40 }
 0x133   :  { %v689_v46 = vadd.f32 %v1060_v45, %v1038_v42 }
 0x14c   :  { %v1077_v47 = vpop.f32.mrb[4].mxu0 }
 0x14d   :  { %v1099_v48 = vpop.f32.mrb[4].mxu1  ;;  %v1078_v49 = vpop.f32.mrb[5].mxu0 }
 0x14e   :  { %v1079_v50 = vadd.f32 %v1078_v49, %v1077_v47  ;;  %v1100_v51 = vpop.f32.mrb[5].mxu1  ;;  %v1080_v52 = vpop.f32.mrb[6].mxu0 }
 0x14f   :  { %v1101_v53 = vadd.f32 %v1100_v51, %v1099_v48  ;;  %v1102_v54 = vpop.f32.mrb[6].mxu1  ;;  %v1081_v55 = vpop.f32.mrb[7].mxu0 }
 0x150   :  { %v727_v56 = vadd.f32 %v1079_v50, %v686_v44  ;;  %v1082_v57 = vadd.f32 %v1081_v55, %v1080_v52  ;;  %v1103_v58 = vpop.f32.mrb[7].mxu1 }
 0x151   :  { %v1104_v59 = vadd.f32 %v1103_v58, %v1102_v54 }
 0x152   :  { %v768_v60 = vadd.f32 %v1101_v53, %v727_v56  ;;  %v730_v61 = vadd.f32 %v1082_v57, %v689_v46 }
 0x154   :  { %v771_v63 = vadd.f32 %v1104_v59, %v730_v61  ;;  %v790_v0 = vadd.f32 %v1007_v62, %v768_v60 }
 0x156   :  { %v791_v1 = vadd.f32 %v1007_v62, %v771_v63  ;;  %792 = vst [vmem:[#allocation8] sm:$0xff] %v790_v0 }
 0x158   :  { %v794_v2 = vpack.c.bf16 %v791_v1, %v790_v0  ;;  %793 = vst [vmem:[#allocation8 + $0x8] sm:$0xff] %v791_v1 }
 0x15a   :  { %1131 = vmatmul.mubr.bf16.vlgmr.msra.gmra.mrb[8].mxu0 %v794_v2 }
 0x15b   :  { %1295 = shalt.err (!%p1292_p0)
}
 0x15c   :  { %s1296_s2 = scalar_lea.hbm %s1467_s5, 256 }
 0x15d   :  { %p1297_p1 = scmp.ne.s32.totalorder %s1467_s5, %s1296_s2  ;;  %p1300_p2 = scmp.lt.u32.totalorder %s1296_s2, %s1467_s5 }
 0x15f   :  { %p1302_p3 = pnand %p1300_p2, %p1297_p1 }
 0x161   :  { %1305 = shalt.err (!%p1302_p3)
}
 0x162   :  { %s1345_s20 = smov 128   ;;  %s1346_s1 = smov 8   ;;  %v1008_v3 = vld [vmem:[%s1466_s4] ss:$0 sm:$0xff] }
 0x163   :  { %920 = dma.vmem_to_hbm [thread:$0]  %s915_s12, 256, %s1467_s5, [#allocation4], %s1345_s20, %s1345_s20, %s1346_s1  }
 0x164   :  { %s1347_s25 = smov [#allocation9]  }
 0x165   :  { %s926_s26 = sshll.u32 %s1347_s25, 4  ;;  %s927_s26 = int_to_ptr.vmem [resolvable:$true] %s926_s26 }
 0x166   :  { %s1306_s27 = scalar_lea.vmem %s927_s26, 256  ;;  %p1311_p5 = scmp.lt.s32.totalorder %s927_s26, %s927_s26 }
 0x167   :  { %p1307_p4 = scmp.ne.s32.totalorder %s927_s26, %s1306_s27  ;;  %p1312_p6 = scmp.lt.s32.totalorder %s1306_s27, %s1306_s27 }
 0x169   :  { %p1313_p7 = por %p1312_p6, %p1311_p5 }
 0x16b   :  { %p1314_p8 = pnand %p1313_p7, %p1307_p4 }
 0x22d   :  { %v900_v4 = vpop.f32.mrb[8].mxu0 }
 0x22e   :  { %v901_v5 = vadd.f32 %v1008_v3, %v900_v4  ;;  %v1132_v6 = vpop.f32.mrb[9].mxu0 }
 0x22f   :  { %v903_v7 = vpop.f32.mrb[10].mxu0 }
 0x230   :  { %907 = vst [vmem:[#allocation9] sm:$0xff] %v901_v5  ;;  %v904_v8 = vadd.f32 %v1008_v3, %v903_v7  ;;  %v1133_v9 = vpop.f32.mrb[11].mxu0 }
 0x232   :  { %908 = vst [vmem:[#allocation9 + $0x8] sm:$0xff] %v904_v8 }
 0x233   :  { %1317 = shalt.err (!%p1314_p8)
}
 0x234   :  { %s1318_s28 = scalar_lea.hbm %s1468_s6, 256 }
 0x235   :  { %p1319_p9 = scmp.ne.s32.totalorder %s1468_s6, %s1318_s28  ;;  %p1322_p10 = scmp.lt.u32.totalorder %s1318_s28, %s1468_s6 }
 0x237   :  { %p1324_p11 = pnand %p1322_p10, %p1319_p9 }
 0x239   :  { %1327 = shalt.err (!%p1324_p11)
}
 0x23a   :  { %932 = dma.vmem_to_hbm [thread:$0]  %s927_s26, 256, %s1468_s6, [#allocation10], %s1345_s20, %s1345_s20, %s1346_s1  }
 0x23b   :  { %1332 = dma.done.wait [#allocation4], 256  }
 0x23c   :  { %1333 = vsyncadd [#allocation4], 4294967040 }
 0x23d   :  { %1334 = dma.done.wait [#allocation10], 256  }
 0x23e   :  { %1335 = vsyncadd [#allocation10], 4294967040 }
 0x23f   :  { %939 = vsyncpa [#allocation3], 1 }
 0x240   :  { %940 = vsyncpa [#allocation6], 1 }
 0x241   :  { %941 = vsyncpa [#allocation4], 1 }
 0x242   :  { %942 = vsyncpa [#allocation10], 1 }

</bundles_post_ra>
